<compile_context>
chip_gen: v6e
topology: v6e:2x2x1
jax: 0.10.0
libtpu: 0.0.40
codegen_flags: <defaults>
</compile_context>

<pallas_src>
import jax
import jax.numpy as jnp
from jax.experimental import pallas as pl
from jax.experimental.pallas import tpu as pltpu


def _backbone_kernel(x_ref, w1_ref, w2_ref, b2_ref, o_ref):
    """One grid step = (batch tile b, point tile n).

    x_ref : (Bt, Nt, Kp) bf16   [xyz | 1 | 0-pad] points
    w1_ref: (Kp, H)      bf16   [W1 ; b1 ; 0-pad]  (bias folded in)
    w2_ref: (H, Fp)      bf16   W2 zero-padded to lane-dense Fp
    b2_ref: (1, Fp)      f32
    o_ref : (Bt, Fp)     f32    running max; resident across the n (point) axis
    """
    n = pl.program_id(1)

    @pl.when(n == 0)
    def _init():
        o_ref[...] = jnp.full_like(o_ref, -jnp.inf)

    bt, nt, kp = x_ref.shape
    # Fused M = Bt*Nt: both matmuls are single large MXU ops.
    x = x_ref[...].reshape(bt * nt, kp)
    h = jnp.dot(x, w1_ref[...], preferred_element_type=jnp.float32)      # bias folded
    h = jnp.maximum(h, 0.0).astype(jnp.bfloat16)
    f = jnp.dot(h, w2_ref[...], preferred_element_type=jnp.float32)      # (Bt*Nt, Fp)
    f = f.reshape(bt, nt, -1)

    # Symmetric max-pool over this point tile, merged into the running max.
    o_ref[...] = jnp.maximum(o_ref[...], jnp.max(f, axis=1))

    @pl.when(n == pl.num_programs(1) - 1)
    def _finalize():
        # Layer-2 bias is a per-feature constant, so it commutes with the max.
        o_ref[...] = o_ref[...] + b2_ref[...]


_TARGET_POINTS_PER_STEP = 16384  # amortizes the ~0.35 us/step pipeline overhead


def _choose_tiles(B, N, block_b, block_n):
    # Point-axis tile: cap so huge clouds don't blow VMEM (64 MiB on v7x).
    if block_n is None:
        Nt = N if N <= 1024 else 1024
    else:
        Nt = block_n
    # Batch-axis tile: pack enough points per grid step to hide per-step overhead.
    if block_b is None:
        bt = max(1, _TARGET_POINTS_PER_STEP // Nt)
        Bt = B if bt >= B else max(8, (bt // 8) * 8)
    else:
        Bt = block_b
    return Bt, Nt


def customized_backbone_forward(xyz, w1, b1, w2, b2, *, block_b=None, block_n=None):
    """xyz: [B, N, 3] f32; W1: [3, H], b1: [H], W2: [H, F], b2: [F] -> [B, F] f32."""
    B, N, K = xyz.shape
    H = w1.shape[1]
    F = w2.shape[1]

    Bt, Nt = _choose_tiles(B, N, block_b, block_n)

    Kp = 8                                   # padded contraction dim: xyz + ones + 0s
    Fp = ((F + 127) // 128) * 128            # lane-dense output width
    Np = ((N + Nt - 1) // Nt) * Nt
    Bp = ((B + Bt - 1) // Bt) * Bt

    # --- layout plumbing (pure XLA, O(input)) ---
    x = xyz
    if Np != N:
        # Pad the point axis with copies of each cloud's first point: max-pool invariant.
        x = jnp.concatenate(
            [x, jnp.broadcast_to(x[:, :1, :], (B, Np - N, K))], axis=1)
    if Bp != B:
        # Padded batch rows produce finite garbage and are sliced off below.
        x = jnp.concatenate([x, jnp.zeros((Bp - B, Np, K), x.dtype)], axis=0)

    # Fold the layer-1 bias into the matmul: x_aug = [x | 1 | 0], w1_aug = [W1; b1; 0].
    x_aug = jnp.concatenate(
        [x,
         jnp.ones((Bp, Np, 1), x.dtype),
         jnp.zeros((Bp, Np, Kp - K - 1), x.dtype)],
        axis=-1).astype(jnp.bfloat16)
    w1_aug = jnp.concatenate(
        [w1, b1.reshape(1, H), jnp.zeros((Kp - K - 1, H), w1.dtype)],
        axis=0).astype(jnp.bfloat16)
    w2_p = jnp.pad(w2, ((0, 0), (0, Fp - F))).astype(jnp.bfloat16)
    b2_p = jnp.pad(b2.reshape(1, F), ((0, 0), (0, Fp - F))).astype(jnp.float32)

    grid = (Bp // Bt, Np // Nt)              # reduction (point) axis last

    # Raise the scoped-VMEM limit only when the blocks are big enough to need it.
    est_block_bytes = (2 * Bt * Nt * 128 * 2          # double-buffered x block (lane-padded)
                       + Bt * Nt * 128 * (2 + 4)      # h (bf16) + f (f32) intermediates
                       + 2 * Bt * Fp * 4)             # resident output block
    cp_kwargs = dict(dimension_semantics=("parallel", "arbitrary"))
    if est_block_bytes > 12 * 1024 * 1024:
        cp_kwargs["vmem_limit_bytes"] = 48 * 1024 * 1024   # < 64 MiB physical on v7x

    out = pl.pallas_call(
        _backbone_kernel,
        out_shape=jax.ShapeDtypeStruct((Bp, Fp), jnp.float32),
        grid=grid,
        in_specs=[
            pl.BlockSpec((Bt, Nt, Kp), lambda b, n: (b, n, 0)),
            pl.BlockSpec((Kp, H), lambda b, n: (0, 0)),   # shared weights stay resident
            pl.BlockSpec((H, Fp), lambda b, n: (0, 0)),
            pl.BlockSpec((1, Fp), lambda b, n: (0, 0)),
        ],
        out_specs=pl.BlockSpec((Bt, Fp), lambda b, n: (b, 0)),
        compiler_params=pltpu.CompilerParams(**cp_kwargs),
    )(x_aug, w1_aug, w2_p, b2_p)

    return out[:B, :F]


def reference_forward(xyz, w1, b1, w2, b2):
    h = jnp.maximum(jnp.einsum("bnd,dh->bnh", xyz, w1) + b1, 0.0)
    f = jnp.einsum("bnh,hf->bnf", h, w2) + b2
    return jnp.max(f, axis=1)


if __name__ == "__main__":
    key = jax.random.PRNGKey(0)
    k_x1, k_x2, k_w1, k_b1, k_w2, k_b2 = jax.random.split(key, 6)

    H, FEAT = 32, 64
    w1 = jax.random.normal(k_w1, (3, H), dtype=jnp.float32) * 0.1
    b1 = jax.random.normal(k_b1, (H,), dtype=jnp.float32) * 0.01
    w2 = jax.random.normal(k_w2, (H, FEAT), dtype=jnp.float32) * 0.1
    b2 = jax.random.normal(k_b2, (FEAT,), dtype=jnp.float32) * 0.01

    # Case 1: small shapes from the module contract (whole batch in one grid step).
    B1, N1 = 2, 128
    x1 = jax.random.normal(k_x1, (B1, N1, 3), dtype=jnp.float32)
    out1 = jax.block_until_ready(customized_backbone_forward(x1, w1, b1, w2, b2))
    ref1 = reference_forward(x1, w1, b1, w2, b2)
    assert out1.shape == (B1, FEAT)
    assert jnp.allclose(out1, ref1, atol=1e-2, rtol=1e-2), \
        float(jnp.max(jnp.abs(out1 - ref1)))

    # Case 2: exercises multi-tile grid, running-max accumulator and batch padding.
    B2, N2 = 12, 192
    x2 = jax.random.normal(k_x2, (B2, N2, 3), dtype=jnp.float32)
    out2 = jax.block_until_ready(
        customized_backbone_forward(x2, w1, b1, w2, b2, block_b=8, block_n=64))
    ref2 = reference_forward(x2, w1, b1, w2, b2)
    assert out2.shape == (B2, FEAT)
    assert jnp.allclose(out2, ref2, atol=1e-2, rtol=1e-2), \
        float(jnp.max(jnp.abs(out2 - ref2)))

    print("KERNEL_OK")
</pallas_src>

<mosaic_0001>
module attributes {stable_mosaic.version = 11 : i64} {
  func.func @_backbone_kernel(%arg0: i32, %arg1: i32, %arg2: memref<2x128x8xbf16, #tpu.memory_space<vmem>>, %arg3: memref<8x32xbf16, #tpu.memory_space<vmem>>, %arg4: memref<32x128xbf16, #tpu.memory_space<vmem>>, %arg5: memref<1x128xf32, #tpu.memory_space<vmem>>, %arg6: memref<2x128xf32, #tpu.memory_space<vmem>>) attributes {dimension_semantics = [#tpu.dimension_semantics<parallel>, #tpu.dimension_semantics<arbitrary>], iteration_bounds = array<i64: 1, 1>, scalar_prefetch = 0 : i64, scratch_operands = 0 : i64, tpu.core_type = #tpu.core_type<tc>, window_params = [{transform_indices = @transform_0, window_bounds = array<i64: 2, 128, 8>}, {pipeline_mode = #tpu.pipeline_mode<synchronous>, transform_indices = @transform_1, window_bounds = array<i64: 8, 32>}, {pipeline_mode = #tpu.pipeline_mode<synchronous>, transform_indices = @transform_2, window_bounds = array<i64: 32, 128>}, {pipeline_mode = #tpu.pipeline_mode<synchronous>, transform_indices = @transform_3, window_bounds = array<i64: 1, 128>}, {transform_indices = @transform_4, window_bounds = array<i64: 2, 128>}]} {
    %c0_i32 = arith.constant 0 : i32
    %0 = arith.cmpi eq, %arg1, %c0_i32 : i32
    %1 = arith.extui %0 : i1 to i32
    %c0_i32_0 = arith.constant 0 : i32
    %2 = arith.cmpi ne, %1, %c0_i32_0 : i32
    scf.if %2 {
      %cst_16 = arith.constant 0xFF800000 : f32
      %20 = vector.broadcast %cst_16 : f32 to vector<2x128xf32>
      %c0_17 = arith.constant 0 : index
      %c0_18 = arith.constant 0 : index
      %21 = vector.load %arg6[%c0_17, %c0_18] : memref<2x128xf32, #tpu.memory_space<vmem>>, vector<2x128xf32>
      tpu.vector_store %arg6[%c0_17, %c0_18], %20 {strides = array<i32>} : memref<2x128xf32, #tpu.memory_space<vmem>>, vector<2x128xf32>,
    } else {
    }
    %c0 = arith.constant 0 : index
    %c0_1 = arith.constant 0 : index
    %c0_2 = arith.constant 0 : index
    %3 = vector.load %arg2[%c0, %c0_1, %c0_2] : memref<2x128x8xbf16, #tpu.memory_space<vmem>>, vector<2x128x8xbf16>
    %4 = vector.shape_cast %3 : vector<2x128x8xbf16> to vector<256x8xbf16>
    %c0_3 = arith.constant 0 : index
    %c0_4 = arith.constant 0 : index
    %5 = vector.load %arg3[%c0_3, %c0_4] : memref<8x32xbf16, #tpu.memory_space<vmem>>, vector<8x32xbf16>
    %cst = arith.constant dense<0.000000e+00> : vector<256x32xf32>
    %6 = tpu.matmul %4, %5, %cst {dimension_numbers = #tpu.dot_dimension_numbers<[1], [0], [0], [1], [0, 0, 1, 1], [], []>} : vector<256x8xbf16>, vector<8x32xbf16>, vector<256x32xf32> -> vector<256x32xf32>
    %cst_5 = arith.constant 0.000000e+00 : f32
    %7 = vector.broadcast %cst_5 : f32 to vector<256x32xf32>
    %8 = arith.maximumf %6, %7 : vector<256x32xf32>
    %9 = arith.truncf %8 : vector<256x32xf32> to vector<256x32xbf16>
    %c0_6 = arith.constant 0 : index
    %c0_7 = arith.constant 0 : index
    %10 = vector.load %arg4[%c0_6, %c0_7] : memref<32x128xbf16, #tpu.memory_space<vmem>>, vector<32x128xbf16>
    %cst_8 = arith.constant dense<0.000000e+00> : vector<256x128xf32>
    %11 = tpu.matmul %9, %10, %cst_8 {dimension_numbers = #tpu.dot_dimension_numbers<[1], [0], [0], [1], [0, 0, 1, 1], [], []>} : vector<256x32xbf16>, vector<32x128xbf16>, vector<256x128xf32> -> vector<256x128xf32>
    %12 = vector.shape_cast %11 : vector<256x128xf32> to vector<2x128x128xf32>
    %c0_9 = arith.constant 0 : index
    %c0_10 = arith.constant 0 : index
    %13 = vector.load %arg6[%c0_9, %c0_10] : memref<2x128xf32, #tpu.memory_space<vmem>>, vector<2x128xf32>
    %cst_11 = arith.constant dense<0xFF800000> : vector<2x128xf32>
    %14 = vector.multi_reduction <maximumf>, %12, %cst_11 [1] : vector<2x128x128xf32> to vector<2x128xf32>
    %15 = arith.maximumf %13, %14 : vector<2x128xf32>
    %c0_12 = arith.constant 0 : index
    %c0_13 = arith.constant 0 : index
    %16 = vector.load %arg6[%c0_12, %c0_13] : memref<2x128xf32, #tpu.memory_space<vmem>>, vector<2x128xf32>
    tpu.vector_store %arg6[%c0_12, %c0_13], %15 {strides = array<i32>} : memref<2x128xf32, #tpu.memory_space<vmem>>, vector<2x128xf32>,
    %c0_i32_14 = arith.constant 0 : i32
    %17 = arith.cmpi eq, %arg1, %c0_i32_14 : i32
    %18 = arith.extui %17 : i1 to i32
    %c0_i32_15 = arith.constant 0 : i32
    %19 = arith.cmpi ne, %18, %c0_i32_15 : i32
    scf.if %19 {
      %c0_16 = arith.constant 0 : index
      %c0_17 = arith.constant 0 : index
      %20 = vector.load %arg6[%c0_16, %c0_17] : memref<2x128xf32, #tpu.memory_space<vmem>>, vector<2x128xf32>
      %c0_18 = arith.constant 0 : index
      %c0_19 = arith.constant 0 : index
      %21 = vector.load %arg5[%c0_18, %c0_19] : memref<1x128xf32, #tpu.memory_space<vmem>>, vector<1x128xf32>
      %22 = vector.broadcast %21 : vector<1x128xf32> to vector<2x128xf32>
      %23 = arith.addf %20, %22 : vector<2x128xf32>
      %c0_20 = arith.constant 0 : index
      %c0_21 = arith.constant 0 : index
      %24 = vector.load %arg6[%c0_20, %c0_21] : memref<2x128xf32, #tpu.memory_space<vmem>>, vector<2x128xf32>
      tpu.vector_store %arg6[%c0_20, %c0_21], %23 {strides = array<i32>} : memref<2x128xf32, #tpu.memory_space<vmem>>, vector<2x128xf32>,
    } else {
    }
    return
  }
  func.func @transform_0(%arg0: i32, %arg1: i32) -> (i32, i32, i32) {
    %c0_i32 = arith.constant 0 : i32
    %c0_i32_0 = arith.constant 0 : i32
    return %arg0, %arg1, %c0_i32 : i32, i32, i32
  }
  func.func @transform_1(%arg0: i32, %arg1: i32) -> (i32, i32) {
    %c0_i32 = arith.constant 0 : i32
    %c0_i32_0 = arith.constant 0 : i32
    %c0_i32_1 = arith.constant 0 : i32
    return %c0_i32, %c0_i32_0 : i32, i32
  }
  func.func @transform_2(%arg0: i32, %arg1: i32) -> (i32, i32) {
    %c0_i32 = arith.constant 0 : i32
    %c0_i32_0 = arith.constant 0 : i32
    %c0_i32_1 = arith.constant 0 : i32
    return %c0_i32, %c0_i32_0 : i32, i32
  }
  func.func @transform_3(%arg0: i32, %arg1: i32) -> (i32, i32) {
    %c0_i32 = arith.constant 0 : i32
    %c0_i32_0 = arith.constant 0 : i32
    %c0_i32_1 = arith.constant 0 : i32
    return %c0_i32, %c0_i32_0 : i32, i32
  }
  func.func @transform_4(%arg0: i32, %arg1: i32) -> (i32, i32) {
    %c0_i32 = arith.constant 0 : i32
    %c0_i32_0 = arith.constant 0 : i32
    return %arg0, %c0_i32 : i32, i32
  }
}

</mosaic_0001>

<bundles_post_ra>
// kernel: tpu_custom_call.1
= control target key start
LH: loop header
LB: loop body
LE: loop exit
PB: predicated region body
PF: predicated region fallthrough
CT: control target
= control target key end

     0   :  { %vm186_vm0 = vcmask 1043456   ;;  %vm137_vm1 = vcmask 64512   ;;  %s1023_s0 = inlined_call_operand.vmem [shape: bf16[2,128,8], index: 0, kind: input, shape index: {}]   ;;  %s1024_s1 = inlined_call_operand.vmem [shape: bf16[8,32], index: 1, kind: input, shape index: {}]   ;;  %s1025_s2 = inlined_call_operand.vmem [shape: bf16[32,128], index: 2, kind: input, shape index: {}]   ;;  %s1026_s3 = inlined_call_operand.vmem [shape: f32[1,128], index: 3, kind: input, shape index: {}]   ;;  %s1027_s4 = inlined_call_operand.hbm [shape: f32[2,128], index: 4, kind: output, shape index: {}]  }
   0x1   :  { %v56_v0 = vld [vmem:[%s1024_s1] sm:$0xf]  ;;  %v862_v3 = vld [vmem:[%s1023_s0 + $0x8] sm:$0xff]   ;;  %v863_v4 = vld [vmem:[%s1023_s0 + $0x10] sm:$0xff]  }
   0x2   :  { %v861_v1 = vld [vmem:[%s1023_s0] sm:$0xff]   ;;  %858 = vmatprep.subr.msk.bf16.mxu0 %vm186_vm0, %v56_v0  ;;  %v188_v2 = vsel %vm186_vm0, %v56_v0, 0  ;;  %v864_v5 = vld [vmem:[%s1023_s0 + $0x18] sm:$0xff]   ;;  %v866_v7 = vld [vmem:[%s1023_s0 + $0x28] sm:$0xff]  }
   0x3   :  { %789 = vmatpush3.bf16.msra.mxu0 %v188_v2  ;;  %790 = vmatprep.mubr.msk.bf16.mxu0 %vm137_vm1, %v861_v1  ;;  %v865_v6 = vld [vmem:[%s1023_s0 + $0x20] sm:$0xff]   ;;  %v867_v8 = vld [vmem:[%s1023_s0 + $0x30] sm:$0xff]  }
   0x6   :  { %791 = vmatmul.mubr.msk.bf16.vlgmr.msra.gmra.mxu0 %vm137_vm1, %v862_v3 }
   0x7   :  { %794 = vmatprep.mubr.msk.bf16.mxu0 %vm137_vm1, %v863_v4 }
   0xe   :  { %795 = vmatmul.mubr.msk.bf16.gmra.mxu0 %vm137_vm1, %v864_v5 }
   0xf   :  { %798 = vmatprep.mubr.msk.bf16.mxu0 %vm137_vm1, %v865_v6 }
  0x10   :  { %9 = vsyncpa [#allocation3], 0  ;;  %v868_v9 = vld [vmem:[%s1023_s0 + $0x38] sm:$0xff]   ;;  %v869_v10 = vld [vmem:[%s1023_s0 + $0x40] sm:$0xff]   ;;  %vm415_vm2 = vcmask 261120   ;;  %vm670_vm3 = vcmask 1041409  }
  0x11   :  { %v870_v11 = vld [vmem:[%s1023_s0 + $0x48] sm:$0xff]   ;;  %v871_v12 = vld [vmem:[%s1023_s0 + $0x50] sm:$0xff]   ;;  %v872_v13 = vld [vmem:[%s1023_s0 + $0x58] sm:$0xff]   ;;  %s902_s25 = smov [#allocation2]  }
  0x12   :  { %v873_v14 = vld [vmem:[%s1023_s0 + $0x60] sm:$0xff]   ;;  %v874_v15 = vld [vmem:[%s1023_s0 + $0x68] sm:$0xff]   ;;  %v875_v16 = vld [vmem:[%s1023_s0 + $0x70] sm:$0xff]   ;;  %s694_s26 = sshll.u32 %s902_s25, 4  ;;  %s695_s26 = int_to_ptr.vmem [resolvable:$true] %s694_s26 }
  0x13   :  { %v876_v17 = vld [vmem:[%s1023_s0 + $0x78] sm:$0xff]   ;;  %v877_v18 = vld [vmem:[%s1025_s2 + $0x8] sm:$0xff]   ;;  %v878_v19 = vld [vmem:[%s1025_s2] sm:$0xff]   ;;  %s879_s27 = scalar_lea.vmem %s695_s26, 32  ;;  %p884_p1 = scmp.lt.s32.totalorder %s695_s26, %s695_s26 }
  0x14   :  { %822 = vmatprep.subr.bf16.mxu1 %v877_v18  ;;  %p880_p0 = scmp.ne.s32.totalorder %s695_s26, %s879_s27  ;;  %p885_p2 = scmp.lt.s32.totalorder %s879_s27, %s879_s27 }
  0x15   :  { %823 = vmatpush3.bf16.msra.mxu1 %v877_v18 }
  0x16   :  { %799 = vmatmul.mubr.msk.bf16.gmra.mxu0 %vm137_vm1, %v866_v7  ;;  %824 = vmatprep.subr.bf16.mxu1 %v878_v19  ;;  %p886_p3 = por %p885_p2, %p884_p1 }
  0x17   :  { %802 = vmatprep.mubr.msk.bf16.mxu0 %vm137_vm1, %v867_v8 }
  0x18   :  { %p887_p4 = pnand %p886_p3, %p880_p0 }
  0x19   :  { %825 = vmatpush3.bf16.msra.mxu1 %v878_v19 }
  0x1e   :  { %803 = vmatmul.mubr.msk.bf16.gmra.mxu0 %vm137_vm1, %v868_v9 }
  0x1f   :  { %806 = vmatprep.mubr.msk.bf16.mxu0 %vm137_vm1, %v869_v10 }
  0x26   :  { %807 = vmatmul.mubr.msk.bf16.gmra.mxu0 %vm137_vm1, %v870_v11 }
  0x27   :  { %810 = vmatprep.mubr.msk.bf16.mxu0 %vm137_vm1, %v871_v12 }
  0x2e   :  { %811 = vmatmul.mubr.msk.bf16.gmra.mxu0 %vm137_vm1, %v872_v13 }
  0x2f   :  { %814 = vmatprep.mubr.msk.bf16.mxu0 %vm137_vm1, %v873_v14 }
  0x36   :  { %815 = vmatmul.mubr.msk.bf16.gmra.mxu0 %vm137_vm1, %v874_v15 }
  0x37   :  { %818 = vmatprep.mubr.msk.bf16.mxu0 %vm137_vm1, %v875_v16 }
  0x3e   :  { %819 = vmatmul.mubr.msk.bf16.gmra.mxu0 %vm137_vm1, %v876_v17 }
  0xc6   :  { %v792_v20 = vpop.f32.mrf.mxu0 }
  0xc7   :  { %v353_v27 = vmax.f32 %v792_v20, 0.0 }
  0xc8   :  { %v224_v21 = vpop.f32.mrf.mxu0 }
  0xc9   :  { %v351_v25 = vmax.f32 %v224_v21, 0.0 }
  0xca   :  { %v793_v22 = vpop.f32.mrf.mxu0 }
  0xcb   :  { %v354_v23 = vmax.f32 %v793_v22, 0.0 }
  0xcc   :  { %v227_v24 = vpop.f32.mrf.mxu0 }
  0xcd   :  { %v352_v26 = vmax.f32 %v227_v24, 0.0  ;;  %v384_v30 = vpack.c.bf16 %v354_v23, %v353_v27 }
  0xce   :  { %v796_v28 = vpop.f32.mrf.mxu0 }
  0xcf   :  { %v383_v29 = vpack.c.bf16 %v352_v26, %v351_v25  ;;  %v357_v37 = vmax.f32 %v796_v28, 0.0 }
  0xd0   :  { %v240_v31 = vpop.f32.mrf.mxu0 }
  0xd1   :  { %826 = vmatprep.mubr.msk.bf16.mxu1 %vm415_vm2, %v383_v29  ;;  %v355_v35 = vmax.f32 %v240_v31, 0.0 }
  0xd2   :  { %v797_v32 = vpop.f32.mrf.mxu0  ;;  %827 = vmatmul.mubr.msk.bf16.vlgmr.msra.gmra.mxu1 %vm415_vm2, %v384_v30 }
  0xd3   :  { %v358_v33 = vmax.f32 %v797_v32, 0.0 }
  0xd4   :  { %v243_v34 = vpop.f32.mrf.mxu0 }
  0xd5   :  { %v356_v36 = vmax.f32 %v243_v34, 0.0  ;;  %v386_v40 = vpack.c.bf16 %v358_v33, %v357_v37 }
  0xd6   :  { %v800_v38 = vpop.f32.mrf.mxu0 }
  0xd7   :  { %v385_v39 = vpack.c.bf16 %v356_v36, %v355_v35  ;;  %v361_v47 = vmax.f32 %v800_v38, 0.0  ;;  %v901_v36 = vmov -inf  }
  0xd8   :  { %v256_v41 = vpop.f32.mrf.mxu0  ;;  %23 = vst [vmem:[#allocation2] sm:$0x3] %v901_v36 }
  0xd9   :  { %830 = vmatprep.mubr.msk.bf16.mxu1 %vm415_vm2, %v385_v39  ;;  %v359_v45 = vmax.f32 %v256_v41, 0.0 }
  0xda   :  { %v801_v42 = vpop.f32.mrf.mxu0  ;;  %831 = vmatmul.mubr.msk.bf16.gmra.mxu1 %vm415_vm2, %v386_v40 }
  0xdb   :  { %v362_v43 = vmax.f32 %v801_v42, 0.0 }
  0xdc   :  { %v259_v44 = vpop.f32.mrf.mxu0 }
  0xdd   :  { %v360_v46 = vmax.f32 %v259_v44, 0.0  ;;  %v388_v50 = vpack.c.bf16 %v362_v43, %v361_v47 }
  0xde   :  { %v804_v48 = vpop.f32.mrf.mxu0 }
  0xdf   :  { %v387_v49 = vpack.c.bf16 %v360_v46, %v359_v45  ;;  %v365_v57 = vmax.f32 %v804_v48, 0.0 }
  0xe0   :  { %v272_v51 = vpop.f32.mrf.mxu0 }
  0xe1   :  { %834 = vmatprep.mubr.msk.bf16.mxu1 %vm415_vm2, %v387_v49  ;;  %v363_v55 = vmax.f32 %v272_v51, 0.0 }
  0xe2   :  { %v805_v52 = vpop.f32.mrf.mxu0  ;;  %835 = vmatmul.mubr.msk.bf16.gmra.mxu1 %vm415_vm2, %v388_v50 }
  0xe3   :  { %v366_v53 = vmax.f32 %v805_v52, 0.0 }
  0xe4   :  { %v275_v54 = vpop.f32.mrf.mxu0 }
  0xe5   :  { %v364_v56 = vmax.f32 %v275_v54, 0.0  ;;  %v390_v60 = vpack.c.bf16 %v366_v53, %v365_v57 }
  0xe6   :  { %v808_v58 = vpop.f32.mrf.mxu0 }
  0xe7   :  { %v389_v59 = vpack.c.bf16 %v364_v56, %v363_v55  ;;  %v369_v3 = vmax.f32 %v808_v58, 0.0 }
  0xe8   :  { %v288_v61 = vpop.f32.mrf.mxu0 }
  0xe9   :  { %838 = vmatprep.mubr.msk.bf16.mxu1 %vm415_vm2, %v389_v59  ;;  %v367_v1 = vmax.f32 %v288_v61, 0.0 }
  0xea   :  { %v809_v62 = vpop.f32.mrf.mxu0  ;;  %839 = vmatmul.mubr.msk.bf16.gmra.mxu1 %vm415_vm2, %v390_v60 }
  0xeb   :  { %v370_v63 = vmax.f32 %v809_v62, 0.0 }
  0xec   :  { %v291_v0 = vpop.f32.mrf.mxu0 }
  0xed   :  { %v368_v2 = vmax.f32 %v291_v0, 0.0  ;;  %v392_v6 = vpack.c.bf16 %v370_v63, %v369_v3 }
  0xee   :  { %v812_v4 = vpop.f32.mrf.mxu0 }
  0xef   :  { %v391_v5 = vpack.c.bf16 %v368_v2, %v367_v1  ;;  %v373_v13 = vmax.f32 %v812_v4, 0.0 }
  0xf0   :  { %v304_v7 = vpop.f32.mrf.mxu0 }
  0xf1   :  { %842 = vmatprep.mubr.msk.bf16.mxu1 %vm415_vm2, %v391_v5  ;;  %v371_v11 = vmax.f32 %v304_v7, 0.0 }
  0xf2   :  { %v813_v8 = vpop.f32.mrf.mxu0  ;;  %843 = vmatmul.mubr.msk.bf16.gmra.mxu1 %vm415_vm2, %v392_v6 }
  0xf3   :  { %v374_v9 = vmax.f32 %v813_v8, 0.0 }
  0xf4   :  { %v307_v10 = vpop.f32.mrf.mxu0 }
  0xf5   :  { %v372_v12 = vmax.f32 %v307_v10, 0.0  ;;  %v394_v16 = vpack.c.bf16 %v374_v9, %v373_v13 }
  0xf6   :  { %v816_v14 = vpop.f32.mrf.mxu0 }
  0xf7   :  { %v393_v15 = vpack.c.bf16 %v372_v12, %v371_v11  ;;  %v377_v23 = vmax.f32 %v816_v14, 0.0 }
  0xf8   :  { %v320_v17 = vpop.f32.mrf.mxu0 }
  0xf9   :  { %846 = vmatprep.mubr.msk.bf16.mxu1 %vm415_vm2, %v393_v15  ;;  %v375_v21 = vmax.f32 %v320_v17, 0.0 }
  0xfa   :  { %v817_v18 = vpop.f32.mrf.mxu0  ;;  %847 = vmatmul.mubr.msk.bf16.gmra.mxu1 %vm415_vm2, %v394_v16 }
  0xfb   :  { %v378_v19 = vmax.f32 %v817_v18, 0.0 }
  0xfc   :  { %v323_v20 = vpop.f32.mrf.mxu0 }
  0xfd   :  { %v376_v22 = vmax.f32 %v323_v20, 0.0  ;;  %v396_v26 = vpack.c.bf16 %v378_v19, %v377_v23 }
  0xfe   :  { %v820_v24 = vpop.f32.mrf.mxu0 }
  0xff   :  { %v395_v25 = vpack.c.bf16 %v376_v22, %v375_v21  ;;  %v381_v33 = vmax.f32 %v820_v24, 0.0 }
 0x100   :  { %v336_v27 = vpop.f32.mrf.mxu0 }
 0x101   :  { %850 = vmatprep.mubr.msk.bf16.mxu1 %vm415_vm2, %v395_v25  ;;  %v379_v31 = vmax.f32 %v336_v27, 0.0 }
 0x102   :  { %v821_v28 = vpop.f32.mrf.mxu0  ;;  %851 = vmatmul.mubr.msk.bf16.gmra.mxu1 %vm415_vm2, %v396_v26 }
 0x103   :  { %v382_v29 = vmax.f32 %v821_v28, 0.0 }
 0x104   :  { %v339_v30 = vpop.f32.mrf.mxu0 }
 0x105   :  { %v380_v32 = vmax.f32 %v339_v30, 0.0  ;;  %v398_v35 = vpack.c.bf16 %v382_v29, %v381_v33 }
 0x107   :  { %v397_v34 = vpack.c.bf16 %v380_v32, %v379_v31 }
 0x109   :  { %854 = vmatprep.mubr.msk.bf16.mxu1 %vm415_vm2, %v397_v34 }
 0x10a   :  { %855 = vmatmul.mubr.msk.bf16.gmra.mxu1 %vm415_vm2, %v398_v35 }
 0x192   :  { %v828_v37 = vpop.f32.mrf.mxu1 }
 0x194   :  { %v498_v38 = vpop.f32.mrf.mxu1 }
 0x195   :  { %v626_v56 = vmax.f32 %v498_v38, %v828_v37 }
 0x196   :  { %v829_v39 = vpop.f32.mrf.mxu1 }
 0x198   :  { %v501_v40 = vpop.f32.mrf.mxu1 }
 0x199   :  { %v627_v54 = vmax.f32 %v501_v40, %v829_v39 }
 0x19a   :  { %v832_v41 = vpop.f32.mrf.mxu1 }
 0x19c   :  { %v514_v42 = vpop.f32.mrf.mxu1 }
 0x19d   :  { %v628_v59 = vmax.f32 %v626_v56, %v514_v42 }
 0x19e   :  { %v833_v43 = vpop.f32.mrf.mxu1 }
 0x19f   :  { %v630_v63 = vmax.f32 %v628_v59, %v832_v41 }
 0x1a0   :  { %v517_v44 = vpop.f32.mrf.mxu1 }
 0x1a1   :  { %v629_v57 = vmax.f32 %v627_v54, %v517_v44 }
 0x1a2   :  { %v836_v45 = vpop.f32.mrf.mxu1 }
 0x1a3   :  { %v631_v61 = vmax.f32 %v629_v57, %v833_v43 }
 0x1a4   :  { %v530_v46 = vpop.f32.mrf.mxu1 }
 0x1a5   :  { %v632_v2 = vmax.f32 %v630_v63, %v530_v46 }
 0x1a6   :  { %v837_v47 = vpop.f32.mrf.mxu1 }
 0x1a7   :  { %v634_v6 = vmax.f32 %v632_v2, %v836_v45 }
 0x1a8   :  { %v533_v48 = vpop.f32.mrf.mxu1 }
 0x1a9   :  { %v633_v0 = vmax.f32 %v631_v61, %v533_v48 }
 0x1aa   :  { %v840_v49 = vpop.f32.mrf.mxu1 }
 0x1ab   :  { %v635_v4 = vmax.f32 %v633_v0, %v837_v47  ;;  %v625_v47 = vld [vmem:[#allocation2] sm:$0x3] }
 0x1ac   :  { %v546_v50 = vpop.f32.mrf.mxu1 }
 0x1ad   :  { %v636_v10 = vmax.f32 %v634_v6, %v546_v50  ;;  %v752_v50 = vld [vmem:[%s1026_s3] ss:$0 sm:$0xff] }
 0x1ae   :  { %v841_v51 = vpop.f32.mrf.mxu1 }
 0x1af   :  { %v638_v17 = vmax.f32 %v636_v10, %v840_v49 }
 0x1b0   :  { %v549_v52 = vpop.f32.mrf.mxu1 }
 0x1b1   :  { %v637_v7 = vmax.f32 %v635_v4, %v549_v52 }
 0x1b2   :  { %v844_v53 = vpop.f32.mrf.mxu1 }
 0x1b3   :  { %v639_v14 = vmax.f32 %v637_v7, %v841_v51 }
 0x1b4   :  { %v562_v55 = vpop.f32.mrf.mxu1 }
 0x1b5   :  { %v647_v8 = vmax.f32 %v562_v55, %v844_v53  ;;  %v640_v20 = vmax.f32 %v638_v17, %v639_v14 }
 0x1b6   :  { %v845_v58 = vpop.f32.mrf.mxu1 }
 0x1b7   :  { %v641_v26 = vrot.slane %v640_v20, 4 }
 0x1b8   :  { %v565_v60 = vpop.f32.mrf.mxu1 }
 0x1b9   :  { %v648_v11 = vmax.f32 %v565_v60, %v845_v58  ;;  %v642_v32 = vmax.f32 %v640_v20, %v641_v26 }
 0x1ba   :  { %v848_v62 = vpop.f32.mrf.mxu1 }
 0x1bb   :  { %v643_v36 = vrot.slane %v642_v32, 2 }
 0x1bc   :  { %v578_v1 = vpop.f32.mrf.mxu1 }
 0x1bd   :  { %v649_v12 = vmax.f32 %v647_v8, %v578_v1  ;;  %v644_v39 = vmax.f32 %v642_v32, %v643_v36 }
 0x1be   :  { %v849_v3 = vpop.f32.mrf.mxu1 }
 0x1bf   :  { %v651_v18 = vmax.f32 %v649_v12, %v848_v62  ;;  %v645_v42 = vrot.slane %v644_v39, 1 }
 0x1c0   :  { %v581_v5 = vpop.f32.mrf.mxu1 }
 0x1c1   :  { %v650_v15 = vmax.f32 %v648_v11, %v581_v5  ;;  %v646_v45 = vmax.f32 %v644_v39, %v645_v42 }
 0x1c2   :  { %v852_v9 = vpop.f32.mrf.mxu1 }
 0x1c3   :  { %v652_v22 = vmax.f32 %v650_v15, %v849_v3 }
 0x1c4   :  { %v594_v13 = vpop.f32.mrf.mxu1 }
 0x1c5   :  { %v653_v21 = vmax.f32 %v651_v18, %v594_v13 }
 0x1c6   :  { %v853_v16 = vpop.f32.mrf.mxu1 }
 0x1c7   :  { %v655_v27 = vmax.f32 %v653_v21, %v852_v9 }
 0x1c8   :  { %v597_v19 = vpop.f32.mrf.mxu1 }
 0x1c9   :  { %v654_v24 = vmax.f32 %v652_v22, %v597_v19 }
 0x1ca   :  { %v856_v23 = vpop.f32.mrf.mxu1 }
 0x1cb   :  { %v656_v30 = vmax.f32 %v654_v24, %v853_v16 }
 0x1cc   :  { %v610_v25 = vpop.f32.mrf.mxu1 }
 0x1cd   :  { %v657_v29 = vmax.f32 %v655_v27, %v610_v25 }
 0x1ce   :  { %v857_v28 = vpop.f32.mrf.mxu1 }
 0x1cf   :  { %v659_v34 = vmax.f32 %v657_v29, %v856_v23 }
 0x1d0   :  { %v613_v31 = vpop.f32.mrf.mxu1 }
 0x1d1   :  { %v658_v33 = vmax.f32 %v656_v30, %v613_v31 }
 0x1d3   :  { %v660_v35 = vmax.f32 %v658_v33, %v857_v28 }
 0x1d5   :  { %v661_v37 = vmax.f32 %v659_v34, %v660_v35 }
 0x1d7   :  { %v662_v38 = vrot.slane %v661_v37, 4 }
 0x1d9   :  { %v663_v40 = vmax.f32 %v661_v37, %v662_v38 }
 0x1db   :  { %v664_v41 = vrot.slane %v663_v40, 2 }
 0x1dd   :  { %v665_v43 = vmax.f32 %v663_v40, %v664_v41 }
 0x1df   :  { %v666_v44 = vrot.slane %v665_v43, 1 }
 0x1e1   :  { %v667_v46 = vmax.f32 %v665_v43, %v666_v44 }
 0x1e3   :  { %v671_v48 = vsel %vm670_vm3, %v667_v46, %v646_v45 }
 0x1e4   :  { %v673_v49 = vmax.f32 %v625_v47, %v671_v48 }
 0x1e6   :  { %674 = vst [vmem:[#allocation2] sm:$0x3] %v673_v49 }
 0x1ed   :  { %v678_v51 = vld [vmem:[#allocation2] sm:$0x3] }
 0x1ee   :  { %v686_v52 = vadd.f32 %v752_v50, %v678_v51 }
 0x1f0   :  { %687 = vst [vmem:[#allocation2] sm:$0x3] %v686_v52 }
 0x1f1   :  { %890 = shalt.err (!%p887_p4)
}
 0x1f2   :  { %697 = dma.vmem_to_hbm [thread:$0]  %s695_s26, 32, %s1027_s4, [#allocation3]  }
 0x1f3   :  { %899 = dma.done.wait [#allocation3], 32  }
 0x1f4   :  { %900 = vsyncadd [#allocation3], 4294967264 }
 0x1f5   :  { %701 = vsyncpa [#allocation3], 1 }

</bundles_post_ra>
